<compile_context>
chip_gen: v6e
topology: v6e:2x2x1
jax: 0.10.0
libtpu: 0.0.40
codegen_flags: <defaults>
</compile_context>

<pallas_src>
import functools

import jax
import jax.numpy as jnp
from jax.experimental import pallas as pl
from jax.experimental.pallas import tpu as pltpu


def _round_up(x, m):
    return ((x + m - 1) // m) * m


def mlp_kernel(x_ref, w1_ref, b1_ref, w2_ref, b2_ref, w3_ref, b3_ref, o_ref):
    # Fused 3-layer MLP on one (TM, input_size) batch tile.
    # Dots: bf16 inputs, f32 MXU accumulation.  Bias add / ReLU: f32 VPU.
    x = x_ref[...].astype(jnp.bfloat16)                              # (TM, IN)

    h1 = jnp.dot(x, w1_ref[...], preferred_element_type=jnp.float32)
    h1 = jnp.maximum(h1 + b1_ref[...], 0.0)                          # (TM, HID_P) f32

    h2 = jnp.dot(h1.astype(jnp.bfloat16), w2_ref[...],
                 preferred_element_type=jnp.float32)
    h2 = jnp.maximum(h2 + b2_ref[...], 0.0)                          # (TM, HID_P) f32

    out = jnp.dot(h2.astype(jnp.bfloat16), w3_ref[...],
                  preferred_element_type=jnp.float32)
    o_ref[...] = (out + b3_ref[...]).astype(o_ref.dtype)             # (TM, OUT_P) f32


def prepare_params(params):
    """One-time prep: pad lane dims to 128 and cast weights to bf16.

    Call once (not per forward step) so the per-call path carries no extra
    pad/cast passes over the weights.  Weights are stored (in, out) =
    transposed nn.Linear layout; biases (1, out).
    """
    w1, b1 = params["w1"], params["b1"]
    w2, b2 = params["w2"], params["b2"]
    w3, b3 = params["w3"], params["b3"]

    input_size, hidden_size = w1.shape
    num_classes = w3.shape[1]
    hid_p = _round_up(hidden_size, 128)
    out_p = _round_up(num_classes, 128)

    def pad2(a, rows, cols, dtype):
        return jnp.pad(a, ((0, rows - a.shape[0]), (0, cols - a.shape[1]))).astype(dtype)

    prepped = {
        # NOTE: the contraction dim of w1 (input_size) is deliberately NOT
        # padded to 128 -- the kernel streams x unpadded, which minimizes the
        # dominant HBM traffic term (streaming x).
        "w1": pad2(w1, input_size, hid_p, jnp.bfloat16),
        "b1": pad2(b1, 1, hid_p, jnp.float32),
        "w2": pad2(w2, hid_p, hid_p, jnp.bfloat16),
        "b2": pad2(b2, 1, hid_p, jnp.float32),
        "w3": pad2(w3, hid_p, out_p, jnp.bfloat16),
        "b3": pad2(b3, 1, out_p, jnp.float32),
    }
    return prepped, num_classes


def _choose_tm(batch):
    """Batch tile: as large as reasonable (amortize ~0.35us per grid step), but
    keep grid length >= 2 when possible so v7x's two TensorCores both get work.
    x/out tiles are f32 in VMEM, so 8-row sublane alignment is sufficient."""
    b8 = _round_up(batch, 8)
    if b8 <= 16:
        return b8                     # single tile; splitting tiny batches isn't worth it
    return min(1024, _round_up(b8 // 2, 8))


@functools.partial(jax.jit, static_argnames=("num_classes",))
def neural_net_forward(x, prepped, *, num_classes):
    """x: (B, input_size) f32.  prepped: output of prepare_params()."""
    w1p, b1p = prepped["w1"], prepped["b1"]
    w2p, b2p = prepped["w2"], prepped["b2"]
    w3p, b3p = prepped["w3"], prepped["b3"]

    B, input_size = x.shape
    hid_p = w1p.shape[1]
    out_p = w3p.shape[1]

    tm = _choose_tm(B)
    b_pad = _round_up(B, tm)
    if b_pad != B:
        # Only the batch dim is ever padded, and only when B % TM != 0.
        x = jnp.pad(x, ((0, b_pad - B), (0, 0)))

    grid = (b_pad // tm,)

    # Weights / biases: constant index_map -> fetched once, VMEM-resident
    # across all batch tiles.
    resident = lambda shape: pl.BlockSpec(shape, lambda i: (0, 0))
    # TODO(synk): for very large hidden sizes (>= ~2048) tile the hidden
    # contraction with a second ("arbitrary") grid axis (and/or pl.Buffered(1)
    # on the weight specs) so the resident bf16 weights fit v7x's 64 MiB VMEM.

    flops = 2 * b_pad * (input_size * hid_p + hid_p * hid_p + hid_p * out_p)
    bytes_accessed = (
        b_pad * input_size * 4                                  # x (f32)
        + (w1p.size + w2p.size + w3p.size) * 2                  # bf16 weights
        + (b1p.size + b2p.size + b3p.size) * 4                  # f32 biases
        + b_pad * out_p * 4                                     # output (f32)
    )

    # Scoped-VMEM ceiling sized to actual usage + headroom: double-buffered
    # x/out tiles, double-buffered resident weights/biases, f32 intermediates.
    vmem_limit = (
        2 * tm * input_size * 4
        + 2 * tm * out_p * 4
        + 2 * 2 * (w1p.size + w2p.size + w3p.size)
        + 2 * 4 * (b1p.size + b2p.size + b3p.size)
        + 4 * tm * hid_p * 4
        + (2 << 20)
    )
    vmem_limit = int(min(max(vmem_limit, 8 << 20), 48 << 20))

    out_padded = pl.pallas_call(
        mlp_kernel,
        out_shape=jax.ShapeDtypeStruct((b_pad, out_p), jnp.float32),
        grid_spec=pltpu.PrefetchScalarGridSpec(
            num_scalar_prefetch=0,
            grid=grid,
            in_specs=[
                pl.BlockSpec((tm, input_size), lambda i: (i, 0)),  # x tile (unpadded K)
                resident((input_size, hid_p)),                     # w1
                resident((1, hid_p)),                              # b1
                resident((hid_p, hid_p)),                          # w2
                resident((1, hid_p)),                              # b2
                resident((hid_p, out_p)),                          # w3
                resident((1, out_p)),                              # b3
            ],
            out_specs=pl.BlockSpec((tm, out_p), lambda i: (i, 0)),
        ),
        compiler_params=pltpu.CompilerParams(
            dimension_semantics=("parallel",),    # batch tiles independent -> megacore
            vmem_limit_bytes=vmem_limit,
        ),
        cost_estimate=pl.CostEstimate(
            flops=flops, transcendentals=0, bytes_accessed=bytes_accessed
        ),
    )(x, w1p, b1p, w2p, b2p, w3p, b3p)

    # Strip batch / lane padding (lane-dense store already happened in-kernel).
    return out_padded[:B, :num_classes]


def init_params(key, input_size, hidden_size, num_classes):
    """Deterministic init mimicking nn.Linear's uniform(-1/sqrt(fan_in), +)."""
    ks = jax.random.split(key, 6)

    def linear(kw, kb, fan_in, fan_out):
        bound = 1.0 / jnp.sqrt(fan_in)
        w = jax.random.uniform(kw, (fan_in, fan_out), jnp.float32, -bound, bound)
        b = jax.random.uniform(kb, (1, fan_out), jnp.float32, -bound, bound)
        return w, b

    w1, b1 = linear(ks[0], ks[1], input_size, hidden_size)
    w2, b2 = linear(ks[2], ks[3], hidden_size, hidden_size)
    w3, b3 = linear(ks[4], ks[5], hidden_size, num_classes)
    return {"w1": w1, "b1": b1, "w2": w2, "b2": b2, "w3": w3, "b3": b3}


if __name__ == "__main__":
    key = jax.random.PRNGKey(0)
    input_size, hidden_size, num_classes = 64, 32, 10

    k_x, k_p = jax.random.split(key)
    params = init_params(k_p, input_size, hidden_size, num_classes)
    prepped, n_cls = prepare_params(params)   # one-time pad + bf16 cast

    def reference(x, p, cast):
        dt = jnp.bfloat16 if cast else jnp.float32

        def dot(a, b):
            return jnp.dot(a.astype(dt), b.astype(dt),
                           preferred_element_type=jnp.float32)

        h1 = jnp.maximum(dot(x, p["w1"]) + p["b1"], 0.0)
        h2 = jnp.maximum(dot(h1, p["w2"]) + p["b2"], 0.0)
        return dot(h2, p["w3"]) + p["b3"]

    # batch=8 exercises the single-tile path; batch=50 the multi-tile +
    # padded-batch path (TM=32, grid=2).
    for batch in (8, 50):
        xb = jax.random.normal(jax.random.fold_in(k_x, batch),
                               (batch, input_size), jnp.float32)
        out = neural_net_forward(xb, prepped, num_classes=n_cls)
        jax.block_until_ready(out)
        assert out.shape == (batch, num_classes)
        # Tight check vs. a reference mirroring the kernel's precision
        # (bf16 matmul inputs, f32 accumulation) ...
        assert jnp.allclose(out, reference(xb, params, cast=True),
                            atol=1e-2, rtol=1e-2)
        # ... and a loose check vs. the full-f32 PyTorch-equivalent forward
        # (intentional bf16 matmul-input precision choice).
        assert jnp.allclose(out, reference(xb, params, cast=False),
                            atol=5e-2, rtol=5e-2)

    print("KERNEL_OK")
</pallas_src>

<mosaic_0001>
module attributes {stable_mosaic.version = 11 : i64} {
  func.func @mlp_kernel(%arg0: i32, %arg1: memref<8x64xf32, #tpu.memory_space<vmem>>, %arg2: memref<64x128xbf16, #tpu.memory_space<vmem>>, %arg3: memref<1x128xf32, #tpu.memory_space<vmem>>, %arg4: memref<128x128xbf16, #tpu.memory_space<vmem>>, %arg5: memref<1x128xf32, #tpu.memory_space<vmem>>, %arg6: memref<128x128xbf16, #tpu.memory_space<vmem>>, %arg7: memref<1x128xf32, #tpu.memory_space<vmem>>, %arg8: memref<8x128xf32, #tpu.memory_space<vmem>>) attributes {dimension_semantics = [#tpu.dimension_semantics<parallel>], iteration_bounds = array<i64: 1>, scalar_prefetch = 0 : i64, scratch_operands = 0 : i64, tpu.core_type = #tpu.core_type<tc>, window_params = [{transform_indices = @transform_0, window_bounds = array<i64: 8, 64>}, {pipeline_mode = #tpu.pipeline_mode<synchronous>, transform_indices = @transform_1, window_bounds = array<i64: 64, 128>}, {pipeline_mode = #tpu.pipeline_mode<synchronous>, transform_indices = @transform_2, window_bounds = array<i64: 1, 128>}, {pipeline_mode = #tpu.pipeline_mode<synchronous>, transform_indices = @transform_3, window_bounds = array<i64: 128, 128>}, {pipeline_mode = #tpu.pipeline_mode<synchronous>, transform_indices = @transform_4, window_bounds = array<i64: 1, 128>}, {pipeline_mode = #tpu.pipeline_mode<synchronous>, transform_indices = @transform_5, window_bounds = array<i64: 128, 128>}, {pipeline_mode = #tpu.pipeline_mode<synchronous>, transform_indices = @transform_6, window_bounds = array<i64: 1, 128>}, {transform_indices = @transform_7, window_bounds = array<i64: 8, 128>}]} {
    %c0 = arith.constant 0 : index
    %c0_0 = arith.constant 0 : index
    %0 = vector.load %arg1[%c0, %c0_0] : memref<8x64xf32, #tpu.memory_space<vmem>>, vector<8x64xf32>
    %1 = arith.truncf %0 : vector<8x64xf32> to vector<8x64xbf16>
    %c0_1 = arith.constant 0 : index
    %c0_2 = arith.constant 0 : index
    %2 = vector.load %arg2[%c0_1, %c0_2] : memref<64x128xbf16, #tpu.memory_space<vmem>>, vector<64x128xbf16>
    %cst = arith.constant dense<0.000000e+00> : vector<8x128xf32>
    %3 = tpu.matmul %1, %2, %cst {dimension_numbers = #tpu.dot_dimension_numbers<[1], [0], [0], [1], [0, 0, 1, 1], [], []>} : vector<8x64xbf16>, vector<64x128xbf16>, vector<8x128xf32> -> vector<8x128xf32>
    %c0_3 = arith.constant 0 : index
    %c0_4 = arith.constant 0 : index
    %4 = vector.load %arg3[%c0_3, %c0_4] : memref<1x128xf32, #tpu.memory_space<vmem>>, vector<1x128xf32>
    %5 = vector.broadcast %4 : vector<1x128xf32> to vector<8x128xf32>
    %6 = arith.addf %3, %5 : vector<8x128xf32>
    %cst_5 = arith.constant 0.000000e+00 : f32
    %7 = vector.broadcast %cst_5 : f32 to vector<8x128xf32>
    %8 = arith.maximumf %6, %7 : vector<8x128xf32>
    %9 = arith.truncf %8 : vector<8x128xf32> to vector<8x128xbf16>
    %c0_6 = arith.constant 0 : index
    %c0_7 = arith.constant 0 : index
    %10 = vector.load %arg4[%c0_6, %c0_7] : memref<128x128xbf16, #tpu.memory_space<vmem>>, vector<128x128xbf16>
    %cst_8 = arith.constant dense<0.000000e+00> : vector<8x128xf32>
    %11 = tpu.matmul %9, %10, %cst_8 {dimension_numbers = #tpu.dot_dimension_numbers<[1], [0], [0], [1], [0, 0, 1, 1], [], []>} : vector<8x128xbf16>, vector<128x128xbf16>, vector<8x128xf32> -> vector<8x128xf32>
    %c0_9 = arith.constant 0 : index
    %c0_10 = arith.constant 0 : index
    %12 = vector.load %arg5[%c0_9, %c0_10] : memref<1x128xf32, #tpu.memory_space<vmem>>, vector<1x128xf32>
    %13 = vector.broadcast %12 : vector<1x128xf32> to vector<8x128xf32>
    %14 = arith.addf %11, %13 : vector<8x128xf32>
    %cst_11 = arith.constant 0.000000e+00 : f32
    %15 = vector.broadcast %cst_11 : f32 to vector<8x128xf32>
    %16 = arith.maximumf %14, %15 : vector<8x128xf32>
    %17 = arith.truncf %16 : vector<8x128xf32> to vector<8x128xbf16>
    %c0_12 = arith.constant 0 : index
    %c0_13 = arith.constant 0 : index
    %18 = vector.load %arg6[%c0_12, %c0_13] : memref<128x128xbf16, #tpu.memory_space<vmem>>, vector<128x128xbf16>
    %cst_14 = arith.constant dense<0.000000e+00> : vector<8x128xf32>
    %19 = tpu.matmul %17, %18, %cst_14 {dimension_numbers = #tpu.dot_dimension_numbers<[1], [0], [0], [1], [0, 0, 1, 1], [], []>} : vector<8x128xbf16>, vector<128x128xbf16>, vector<8x128xf32> -> vector<8x128xf32>
    %c0_15 = arith.constant 0 : index
    %c0_16 = arith.constant 0 : index
    %20 = vector.load %arg7[%c0_15, %c0_16] : memref<1x128xf32, #tpu.memory_space<vmem>>, vector<1x128xf32>
    %21 = vector.broadcast %20 : vector<1x128xf32> to vector<8x128xf32>
    %22 = arith.addf %19, %21 : vector<8x128xf32>
    %c0_17 = arith.constant 0 : index
    %c0_18 = arith.constant 0 : index
    %23 = vector.load %arg8[%c0_17, %c0_18] : memref<8x128xf32, #tpu.memory_space<vmem>>, vector<8x128xf32>
    tpu.vector_store %arg8[%c0_17, %c0_18], %22 {strides = array<i32>} : memref<8x128xf32, #tpu.memory_space<vmem>>, vector<8x128xf32>,
    return
  }
  func.func @transform_0(%arg0: i32) -> (i32, i32) {
    %c0_i32 = arith.constant 0 : i32
    %c0_i32_0 = arith.constant 0 : i32
    return %arg0, %c0_i32 : i32, i32
  }
  func.func @transform_1(%arg0: i32) -> (i32, i32) {
    %c0_i32 = arith.constant 0 : i32
    %c0_i32_0 = arith.constant 0 : i32
    %c0_i32_1 = arith.constant 0 : i32
    return %c0_i32, %c0_i32_0 : i32, i32
  }
  func.func @transform_2(%arg0: i32) -> (i32, i32) {
    %c0_i32 = arith.constant 0 : i32
    %c0_i32_0 = arith.constant 0 : i32
    %c0_i32_1 = arith.constant 0 : i32
    return %c0_i32, %c0_i32_0 : i32, i32
  }
  func.func @transform_3(%arg0: i32) -> (i32, i32) {
    %c0_i32 = arith.constant 0 : i32
    %c0_i32_0 = arith.constant 0 : i32
    %c0_i32_1 = arith.constant 0 : i32
    return %c0_i32, %c0_i32_0 : i32, i32
  }
  func.func @transform_4(%arg0: i32) -> (i32, i32) {
    %c0_i32 = arith.constant 0 : i32
    %c0_i32_0 = arith.constant 0 : i32
    %c0_i32_1 = arith.constant 0 : i32
    return %c0_i32, %c0_i32_0 : i32, i32
  }
  func.func @transform_5(%arg0: i32) -> (i32, i32) {
    %c0_i32 = arith.constant 0 : i32
    %c0_i32_0 = arith.constant 0 : i32
    %c0_i32_1 = arith.constant 0 : i32
    return %c0_i32, %c0_i32_0 : i32, i32
  }
  func.func @transform_6(%arg0: i32) -> (i32, i32) {
    %c0_i32 = arith.constant 0 : i32
    %c0_i32_0 = arith.constant 0 : i32
    %c0_i32_1 = arith.constant 0 : i32
    return %c0_i32, %c0_i32_0 : i32, i32
  }
  func.func @transform_7(%arg0: i32) -> (i32, i32) {
    %c0_i32 = arith.constant 0 : i32
    %c0_i32_0 = arith.constant 0 : i32
    return %arg0, %c0_i32 : i32, i32
  }
}

</mosaic_0001>

<bundles_post_ra>
// kernel: neural_net_forward.1
= control target key start
LH: loop header
LB: loop body
LE: loop exit
PB: predicated region body
PF: predicated region fallthrough
CT: control target
= control target key end

     0   :  { %12 = vsyncpa [#allocation3], 0  ;;  %s754_s0 = inlined_call_operand.hbm [shape: f32[8,64], index: 0, kind: input, shape index: {}]   ;;  %s755_s1 = inlined_call_operand.hbm [shape: bf16[64,128], index: 1, kind: input, shape index: {}]   ;;  %s756_s2 = inlined_call_operand.vmem [shape: f32[1,128], index: 2, kind: input, shape index: {}]   ;;  %s757_s3 = inlined_call_operand.hbm [shape: bf16[128,128], index: 3, kind: input, shape index: {}]   ;;  %s758_s4 = inlined_call_operand.vmem [shape: f32[1,128], index: 4, kind: input, shape index: {}]   ;;  %s759_s5 = inlined_call_operand.hbm [shape: bf16[128,128], index: 5, kind: input, shape index: {}]   ;;  %s760_s6 = inlined_call_operand.vmem [shape: f32[1,128], index: 6, kind: input, shape index: {}]   ;;  %s761_s7 = inlined_call_operand.hbm [shape: f32[8,128], index: 7, kind: output, shape index: {}]  }
   0x1   :  { %13 = vsyncpa [#allocation6], 0 }
   0x2   :  { %14 = vsyncpa [#allocation9], 0 }
   0x3   :  { %15 = vsyncpa [#allocation4], 0  ;;  %s646_s24 = smov [#allocation5]  }
   0x4   :  { %s31_s25 = sshll.u32 %s646_s24, 4  ;;  %s32_s25 = int_to_ptr.vmem [resolvable:$true] %s31_s25 }
   0x5   :  { %s546_s26 = scalar_lea.vmem %s32_s25, 512  ;;  %p551_p1 = scmp.lt.s32.totalorder %s32_s25, %s32_s25 }
   0x6   :  { %p547_p0 = scmp.ne.s32.totalorder %s32_s25, %s546_s26  ;;  %p552_p2 = scmp.lt.s32.totalorder %s546_s26, %s546_s26 }
   0x8   :  { %p553_p3 = por %p552_p2, %p551_p1 }
   0xa   :  { %p554_p4 = pnand %p553_p3, %p547_p0 }
   0xc   :  { %557 = shalt.err (!%p554_p4)
}
   0xd   :  { %s647_s27 = smov 64   ;;  %s648_s28 = smov 4  }
   0xe   :  { %37 = dma.hbm_to_vmem [thread:$0]  %s755_s1, 512, %s32_s25, [#allocation6], %s647_s27, %s647_s27, %s648_s28  }
   0xf   :  { %s649_s8 = smov [#allocation2]   ;;  %s650_s10 = smov [#allocation7]  }
  0x10   :  { %s22_s9 = sshll.u32 %s649_s8, 4  ;;  %s45_s11 = sshll.u32 %s650_s10, 4  ;;  %s23_s9 = int_to_ptr.vmem [resolvable:$true] %s22_s9  ;;  %s46_s11 = int_to_ptr.vmem [resolvable:$true] %s45_s11 }
  0x11   :  { %s566_s12 = scalar_lea.vmem %s23_s9, 128  ;;  %p571_p6 = scmp.lt.s32.totalorder %s23_s9, %s23_s9 }
  0x12   :  { %p567_p5 = scmp.ne.s32.totalorder %s23_s9, %s566_s12  ;;  %p572_p7 = scmp.lt.s32.totalorder %s566_s12, %s566_s12 }
  0x14   :  { %p573_p8 = por %p572_p7, %p571_p6 }
  0x16   :  { %p574_p9 = pnand %p573_p8, %p567_p5 }
  0x18   :  { %577 = shalt.err (!%p574_p9)
}
  0x19   :  { %25 = dma.hbm_to_vmem [thread:$0]  %s754_s0, 128, %s23_s9, [#allocation3]  }
  0x1a   :  { %s586_s15 = scalar_lea.vmem %s46_s11, 1024  ;;  %p591_p11 = scmp.lt.s32.totalorder %s46_s11, %s46_s11 }
  0x1b   :  { %p587_p10 = scmp.ne.s32.totalorder %s46_s11, %s586_s15  ;;  %p592_p12 = scmp.lt.s32.totalorder %s586_s15, %s586_s15 }
  0x1d   :  { %p593_p13 = por %p592_p12, %p591_p11 }
  0x1f   :  { %p594_p0 = pnand %p593_p13, %p587_p10 }
  0x21   :  { %597 = shalt.err (!%p594_p0)
}
  0x22   :  { %51 = dma.hbm_to_vmem [thread:$0]  %s757_s3, 1024, %s46_s11, [#allocation6], %s647_s27, %s647_s27, %s648_s28  }
  0x23   :  { %s651_s17 = smov [#allocation8]  }
  0x24   :  { %s59_s18 = sshll.u32 %s651_s17, 4  ;;  %s60_s18 = int_to_ptr.vmem [resolvable:$true] %s59_s18 }
  0x25   :  { %s606_s19 = scalar_lea.vmem %s60_s18, 1024  ;;  %p611_p2 = scmp.lt.s32.totalorder %s60_s18, %s60_s18 }
  0x26   :  { %p607_p1 = scmp.ne.s32.totalorder %s60_s18, %s606_s19  ;;  %p612_p3 = scmp.lt.s32.totalorder %s606_s19, %s606_s19 }
  0x28   :  { %p613_p4 = por %p612_p3, %p611_p2 }
  0x2a   :  { %p614_p5 = pnand %p613_p4, %p607_p1 }
  0x2c   :  { %617 = shalt.err (!%p614_p5)
}
  0x2d   :  { %65 = dma.hbm_to_vmem [thread:$0]  %s759_s5, 1024, %s60_s18, [#allocation9], %s647_s27, %s647_s27, %s648_s28  }
  0x2e   :  { %638 = dma.done.wait [#allocation3], 128  }
  0x2f   :  { %639 = vsyncadd [#allocation3], 4294967168 }
  0x30   :  { %640 = dma.done.wait [#allocation6], 1536  }
  0x31   :  { %641 = vsyncadd [#allocation6], 4294965760 }
  0x32   :  { %642 = dma.done.wait [#allocation9], 1024  }
  0x33   :  { %643 = vsyncadd [#allocation9], 4294966272  ;;  %v652_v0 = vmov 0.0   ;;  %vm653_vm0 = vmmov 0   ;;  %v518_v1 = vld [vmem:[#allocation5 + $0x18] sm:$0xff]   ;;  %v519_v2 = vld [vmem:[#allocation5 + $0x10] sm:$0xff]  }
  0x34   :  { %457 = vmatprep.subr.bf16.mxu0 %v652_v0  ;;  %465 = vmatprep.mubr.msk.bf16.mxu0 %vm653_vm0, %v652_v0  ;;  %v522_v3 = vld [vmem:[#allocation7 + $0x38] sm:$0xff]   ;;  %v520_v4 = vld [vmem:[#allocation5 + $0x8] sm:$0xff]   ;;  %v523_v5 = vld [vmem:[#allocation7 + $0x30] sm:$0xff]   ;;  %vm122_vm1 = vcmask 523264   ;;  %s654_s24 = smov [#allocation10]  }
  0x35   :  { %469 = vmatprep.subr.bf16.mxu1 %v652_v0  ;;  %485 = vmatprep.mubr.msk.bf16.mxu1 %vm653_vm0, %v652_v0  ;;  %v521_v6 = vld [vmem:[#allocation5] sm:$0xff]   ;;  %v81_v7 = vld [vmem:[#allocation2] sm:$0xff]  ;;  %v524_v8 = vld [vmem:[#allocation7 + $0x28] sm:$0xff]   ;;  %s399_s25 = sshll.u32 %s654_s24, 4  ;;  %s400_s25 = int_to_ptr.vmem [resolvable:$true] %s399_s25 }
  0x36   :  { %458 = vmatpush3.bf16.msra.mxu0 %v518_v1  ;;  %470 = vmatpush3.bf16.msra.mxu1 %v522_v3  ;;  %v82_v9 = vpack.c.bf16 %v81_v7, %v81_v7  ;;  %v525_v10 = vld [vmem:[#allocation7 + $0x20] sm:$0xff]   ;;  %v526_v11 = vld [vmem:[#allocation7 + $0x18] sm:$0xff]   ;;  %v527_v12 = vld [vmem:[#allocation7 + $0x10] sm:$0xff]   ;;  %p623_p7 = scmp.lt.s32.totalorder %s400_s25, %s400_s25 }
  0x37   :  { %459 = vmatprep.subr.bf16.mxu0 %v652_v0  ;;  %471 = vmatprep.subr.bf16.mxu1 %v652_v0  ;;  %v528_v13 = vld [vmem:[#allocation7 + $0x8] sm:$0xff]   ;;  %v529_v14 = vld [vmem:[#allocation7] sm:$0xff]   ;;  %v530_v15 = vld [vmem:[#allocation8 + $0x38] sm:$0xff]  }
  0x38   :  { %v531_v16 = vld [vmem:[#allocation8 + $0x30] sm:$0xff]   ;;  %v532_v17 = vld [vmem:[#allocation8 + $0x28] sm:$0xff]   ;;  %v533_v18 = vld [vmem:[#allocation8 + $0x20] sm:$0xff]  }
  0x39   :  { %v534_v19 = vld [vmem:[#allocation8 + $0x18] sm:$0xff]   ;;  %v535_v20 = vld [vmem:[#allocation8 + $0x10] sm:$0xff]   ;;  %v536_v29 = vld [vmem:[#allocation8 + $0x8] sm:$0xff]  }
  0x3a   :  { %460 = vmatpush3.bf16.msra.mxu0 %v519_v2  ;;  %472 = vmatpush3.bf16.msra.mxu1 %v523_v5  ;;  %v410_v21 = vld [vmem:[%s756_s2] ss:$0 sm:$0xff]  ;;  %v537_v30 = vld [vmem:[#allocation8] sm:$0xff]  }
  0x3b   :  { %461 = vmatprep.subr.bf16.mxu0 %v652_v0  ;;  %473 = vmatprep.subr.bf16.mxu1 %v652_v0  ;;  %v416_v31 = vld [vmem:[%s758_s4] ss:$0 sm:$0xff]  ;;  %s618_s4 = scalar_lea.vmem %s400_s25, 128 }
  0x3c   :  { %v425_v39 = vld [vmem:[%s760_s6] ss:$0 sm:$0xff]  ;;  %p619_p6 = scmp.ne.s32.totalorder %s400_s25, %s618_s4  ;;  %p624_p8 = scmp.lt.s32.totalorder %s618_s4, %s618_s4 }
  0x3e   :  { %462 = vmatpush3.bf16.msra.mxu0 %v520_v4  ;;  %474 = vmatpush3.bf16.msra.mxu1 %v524_v8  ;;  %p625_p9 = por %p624_p8, %p623_p7 }
  0x3f   :  { %463 = vmatprep.subr.bf16.mxu0 %v652_v0  ;;  %475 = vmatprep.subr.bf16.mxu1 %v652_v0 }
  0x40   :  { %p626_p10 = pnand %p625_p9, %p619_p6 }
  0x42   :  { %464 = vmatpush3.bf16.msra.mxu0 %v521_v6  ;;  %476 = vmatpush3.bf16.msra.mxu1 %v525_v10 }
  0x43   :  { %489 = vmatprep.subr.bf16.mxu0 %v652_v0  ;;  %477 = vmatprep.subr.bf16.mxu1 %v652_v0 }
  0x45   :  { %466 = vmatmul.mubr.msk.bf16.vlgmr.msra.gmra.mxu0 %vm122_vm1, %v82_v9 }
  0x46   :  { %505 = vmatprep.mubr.msk.bf16.mxu0 %vm653_vm0, %v652_v0  ;;  %478 = vmatpush3.bf16.msra.mxu1 %v526_v11 }
  0x47   :  { %479 = vmatprep.subr.bf16.mxu1 %v652_v0  ;;  %490 = vmatpush3.bf16.msra.mxu0 %v530_v15 }
  0x48   :  { %491 = vmatprep.subr.bf16.mxu0 %v652_v0 }
  0x4a   :  { %480 = vmatpush3.bf16.msra.mxu1 %v527_v12 }
  0x4b   :  { %481 = vmatprep.subr.bf16.mxu1 %v652_v0  ;;  %492 = vmatpush3.bf16.msra.mxu0 %v531_v16 }
  0x4c   :  { %493 = vmatprep.subr.bf16.mxu0 %v652_v0 }
  0x4e   :  { %482 = vmatpush3.bf16.msra.mxu1 %v528_v13 }
  0x4f   :  { %483 = vmatprep.subr.bf16.mxu1 %v652_v0  ;;  %494 = vmatpush3.bf16.msra.mxu0 %v532_v17 }
  0x50   :  { %495 = vmatprep.subr.bf16.mxu0 %v652_v0 }
  0x52   :  { %484 = vmatpush3.bf16.msra.mxu1 %v529_v14 }
  0x53   :  { %496 = vmatpush3.bf16.msra.mxu0 %v533_v18 }
  0x54   :  { %497 = vmatprep.subr.bf16.mxu0 %v652_v0 }
  0x57   :  { %498 = vmatpush3.bf16.msra.mxu0 %v534_v19 }
  0x58   :  { %499 = vmatprep.subr.bf16.mxu0 %v652_v0 }
  0x5b   :  { %500 = vmatpush3.bf16.msra.mxu0 %v535_v20 }
  0x5c   :  { %501 = vmatprep.subr.bf16.mxu0 %v652_v0 }
  0x5f   :  { %502 = vmatpush3.bf16.msra.mxu0 %v536_v29 }
  0x60   :  { %503 = vmatprep.subr.bf16.mxu0 %v652_v0 }
  0x63   :  { %504 = vmatpush3.bf16.msra.mxu0 %v537_v30 }
 0x105   :  { %v160_v22 = vpop.f32.mrf.mxu0 }
 0x106   :  { %v161_v23 = vadd.f32 %v410_v21, %v160_v22 }
 0x107   :  { %v467_v24 = vpop.f32.mrf.mxu0 }
 0x108   :  { %v166_v25 = vmax.f32 %v161_v23, 0.0 }
 0x109   :  { %v163_v26 = vpop.f32.mrf.mxu0 }
 0x10a   :  { %v167_v27 = vpack.c.bf16 %v166_v25, %v166_v25 }
 0x10b   :  { %v468_v28 = vpop.f32.mrf.mxu0 }
 0x10c   :  { %486 = vmatmul.mubr.bf16.vlgmr.msra.gmra.mxu1 %v167_v27 }
 0x1cc   :  { %v273_v32 = vpop.f32.mrf.mxu1 }
 0x1cd   :  { %v274_v33 = vadd.f32 %v416_v31, %v273_v32 }
 0x1ce   :  { %v487_v34 = vpop.f32.mrf.mxu1 }
 0x1cf   :  { %v279_v35 = vmax.f32 %v274_v33, 0.0 }
 0x1d0   :  { %v276_v36 = vpop.f32.mrf.mxu1 }
 0x1d1   :  { %v280_v37 = vpack.c.bf16 %v279_v35, %v279_v35 }
 0x1d2   :  { %v488_v38 = vpop.f32.mrf.mxu1 }
 0x1d3   :  { %506 = vmatmul.mubr.bf16.vlgmr.msra.gmra.mxu0 %v280_v37 }
 0x293   :  { %v386_v40 = vpop.f32.mrf.mxu0 }
 0x294   :  { %v387_v41 = vadd.f32 %v425_v39, %v386_v40 }
 0x295   :  { %v507_v42 = vpop.f32.mrf.mxu0 }
 0x296   :  { %392 = vst [vmem:[#allocation10] sm:$0xff] %v387_v41 }
 0x297   :  { %v389_v43 = vpop.f32.mrf.mxu0 }
 0x298   :  { %629 = shalt.err (!%p626_p10)
}
 0x299   :  { %402 = dma.vmem_to_hbm [thread:$0]  %s400_s25, 128, %s761_s7, [#allocation4]   ;;  %v508_v44 = vpop.f32.mrf.mxu0 }
 0x29a   :  { %644 = dma.done.wait [#allocation4], 128  }
 0x29b   :  { %645 = vsyncadd [#allocation4], 4294967168 }
 0x29c   :  { %406 = vsyncpa [#allocation3], 1 }
 0x29d   :  { %407 = vsyncpa [#allocation6], 1 }
 0x29e   :  { %408 = vsyncpa [#allocation9], 1 }
 0x29f   :  { %409 = vsyncpa [#allocation4], 1 }

</bundles_post_ra>
